<compile_context>
chip_gen: v5e
topology: v5e:2x2
jax: 0.10.0
libtpu: 0.0.40
codegen_flags: <defaults>
</compile_context>

<pallas_src>
import jax
import jax.numpy as jnp
from jax import lax
from jax.experimental import pallas as pl
from jax.experimental.pallas import tpu as pltpu


def _generator_kernel(z_ref, w1_ref, b1_ref, w2_ref, b2_ref, out_ref):
    # h = relu(z @ W1^T + b1); W1 is [n_hidden, n_latent] -> contract dim 1 of both.
    z_bf = z_ref[...].astype(jnp.bfloat16)               # in-register cast, no HBM cost
    h = lax.dot_general(
        z_bf, w1_ref[...],
        dimension_numbers=(((1,), (1,)), ((), ())),
        preferred_element_type=jnp.float32)               # f32 accumulation on MXU
    h = jnp.maximum(h + b1_ref[...], 0.0)                  # bias/ReLU in f32 (v5e-safe)

    # x = h @ W2^T + b2; W2 is pre-padded to a lane-dense output width.
    x = lax.dot_general(
        h.astype(jnp.bfloat16), w2_ref[...],
        dimension_numbers=(((1,), (1,)), ((), ())),
        preferred_element_type=jnp.float32)
    out_ref[...] = (x + b2_ref[...]).astype(out_ref.dtype)


def prepare_generator_params(W_1, b_1, W_2, b_2):
    """One-time parameter prep (per weight update), kept OUT of the forward path:
    bf16 weights, output dim padded to a multiple of 128, biases as (1, N) f32."""
    n_hidden, _ = W_1.shape
    n_input = W_2.shape[0]
    n_out_pad = ((n_input + 127) // 128) * 128

    w1 = W_1.astype(jnp.bfloat16)                                   # [n_hidden, n_latent]
    b1 = b_1.reshape(1, n_hidden).astype(jnp.float32)               # [1, n_hidden]
    w2 = jnp.zeros((n_out_pad, n_hidden), jnp.bfloat16)
    w2 = w2.at[:n_input].set(W_2.astype(jnp.bfloat16))              # [n_out_pad, n_hidden]
    b2 = jnp.zeros((1, n_out_pad), jnp.float32)
    b2 = b2.at[:, :n_input].set(b_2.reshape(1, n_input).astype(jnp.float32))
    return w1, b1, w2, b2


def generator_forward(z, w1, b1, w2, b2, n_input):
    """z: [B, n_latent] f32; prepped params from prepare_generator_params."""
    B = z.shape[0]
    n_out_pad = w2.shape[0]

    out_pad = pl.pallas_call(
        _generator_kernel,
        out_shape=jax.ShapeDtypeStruct((B, n_out_pad), z.dtype),
        # Small shapes: single grid point, every operand is one full VMEM block.
        in_specs=[
            pl.BlockSpec(z.shape, lambda: (0, 0)),
            pl.BlockSpec(w1.shape, lambda: (0, 0)),
            pl.BlockSpec(b1.shape, lambda: (0, 0)),
            pl.BlockSpec(w2.shape, lambda: (0, 0)),
            pl.BlockSpec(b2.shape, lambda: (0, 0)),
        ],
        out_specs=pl.BlockSpec((B, n_out_pad), lambda: (0, 0)),
        compiler_params=pltpu.CompilerParams(),
    )(z, w1, b1, w2, b2)
    return out_pad[:, :n_input]


if __name__ == "__main__":
    # Small, deterministic setup consistent with the module's forward.
    B = 8           # batch
    n_latent = 32   # z feature dim
    n_input = 64    # output dim
    n_hidden = 512  # fixed in the module

    key = jax.random.PRNGKey(0)
    k_z, k_w1, k_b1, k_w2, k_b2 = jax.random.split(key, 5)

    z = jax.random.normal(k_z, (B, n_latent), dtype=jnp.float32)
    # Parameters: normal(mean=0, std=0.1), matching torch init shapes.
    W_1 = 0.1 * jax.random.normal(k_w1, (n_hidden, n_latent), dtype=jnp.float32)
    b_1 = 0.1 * jax.random.normal(k_b1, (n_hidden,), dtype=jnp.float32)
    W_2 = 0.1 * jax.random.normal(k_w2, (n_input, n_hidden), dtype=jnp.float32)
    b_2 = 0.1 * jax.random.normal(k_b2, (n_input,), dtype=jnp.float32)

    # One-time prep (bf16 cast + lane padding) — not part of the per-call path.
    w1, b1, w2, b2 = prepare_generator_params(W_1, b_1, W_2, b_2)

    out = generator_forward(z, w1, b1, w2, b2, n_input)
    jax.block_until_ready(out)
    assert out.shape == (B, n_input)

    # Tight check: reference mirroring the kernel's bf16-input / f32-accumulate math.
    h_ref = jnp.maximum(
        jnp.dot(z.astype(jnp.bfloat16), W_1.astype(jnp.bfloat16).T,
                preferred_element_type=jnp.float32) + b_1, 0.0)
    ref_bf = jnp.dot(h_ref.astype(jnp.bfloat16), W_2.astype(jnp.bfloat16).T,
                     preferred_element_type=jnp.float32) + b_2
    assert jnp.allclose(out, ref_bf, atol=2e-3, rtol=2e-3), "mismatch vs bf16 reference"

    # Sanity check vs. the full-f32 module semantics (loose: bf16 weight precision).
    ref_f32 = jnp.maximum(z @ W_1.T + b_1, 0.0) @ W_2.T + b_2
    assert jnp.allclose(out, ref_f32, atol=1e-1, rtol=1e-1), "mismatch vs f32 reference"

    print("KERNEL_OK")
</pallas_src>

<mosaic_0001>
module attributes {stable_mosaic.version = 11 : i64} {
  func.func @_generator_kernel(%arg0: memref<8x32xf32, #tpu.memory_space<vmem>>, %arg1: memref<512x32xbf16, #tpu.memory_space<vmem>>, %arg2: memref<1x512xf32, #tpu.memory_space<vmem>>, %arg3: memref<128x512xbf16, #tpu.memory_space<vmem>>, %arg4: memref<1x128xf32, #tpu.memory_space<vmem>>, %arg5: memref<8x128xf32, #tpu.memory_space<vmem>>) attributes {dimension_semantics = [], scalar_prefetch = 0 : i64, scratch_operands = 0 : i64, tpu.core_type = #tpu.core_type<tc>} {
    %c0 = arith.constant 0 : index
    %c0_0 = arith.constant 0 : index
    %0 = vector.load %arg0[%c0, %c0_0] : memref<8x32xf32, #tpu.memory_space<vmem>>, vector<8x32xf32>
    %1 = arith.truncf %0 : vector<8x32xf32> to vector<8x32xbf16>
    %c0_1 = arith.constant 0 : index
    %c0_2 = arith.constant 0 : index
    %2 = vector.load %arg1[%c0_1, %c0_2] : memref<512x32xbf16, #tpu.memory_space<vmem>>, vector<512x32xbf16>
    %cst = arith.constant dense<0.000000e+00> : vector<8x512xf32>
    %3 = tpu.matmul %1, %2, %cst {dimension_numbers = #tpu.dot_dimension_numbers<[1], [1], [0], [0], [0, 0, 1, 0], [], []>} : vector<8x32xbf16>, vector<512x32xbf16>, vector<8x512xf32> -> vector<8x512xf32>
    %c0_3 = arith.constant 0 : index
    %c0_4 = arith.constant 0 : index
    %4 = vector.load %arg2[%c0_3, %c0_4] : memref<1x512xf32, #tpu.memory_space<vmem>>, vector<1x512xf32>
    %5 = vector.broadcast %4 : vector<1x512xf32> to vector<8x512xf32>
    %6 = arith.addf %3, %5 : vector<8x512xf32>
    %cst_5 = arith.constant 0.000000e+00 : f32
    %7 = vector.broadcast %cst_5 : f32 to vector<8x512xf32>
    %8 = arith.maximumf %6, %7 : vector<8x512xf32>
    %9 = arith.truncf %8 : vector<8x512xf32> to vector<8x512xbf16>
    %c0_6 = arith.constant 0 : index
    %c0_7 = arith.constant 0 : index
    %10 = vector.load %arg3[%c0_6, %c0_7] : memref<128x512xbf16, #tpu.memory_space<vmem>>, vector<128x512xbf16>
    %cst_8 = arith.constant dense<0.000000e+00> : vector<8x128xf32>
    %11 = tpu.matmul %9, %10, %cst_8 {dimension_numbers = #tpu.dot_dimension_numbers<[1], [1], [0], [0], [0, 0, 1, 0], [], []>} : vector<8x512xbf16>, vector<128x512xbf16>, vector<8x128xf32> -> vector<8x128xf32>
    %c0_9 = arith.constant 0 : index
    %c0_10 = arith.constant 0 : index
    %12 = vector.load %arg4[%c0_9, %c0_10] : memref<1x128xf32, #tpu.memory_space<vmem>>, vector<1x128xf32>
    %13 = vector.broadcast %12 : vector<1x128xf32> to vector<8x128xf32>
    %14 = arith.addf %11, %13 : vector<8x128xf32>
    %c0_11 = arith.constant 0 : index
    %c0_12 = arith.constant 0 : index
    %15 = vector.load %arg5[%c0_11, %c0_12] : memref<8x128xf32, #tpu.memory_space<vmem>>, vector<8x128xf32>
    tpu.vector_store %arg5[%c0_11, %c0_12], %14 {strides = array<i32>} : memref<8x128xf32, #tpu.memory_space<vmem>>, vector<8x128xf32>,
    return
  }
}

</mosaic_0001>

<bundles_post_ra>
// kernel: tpu_custom_call.1
= control target key start
LH: loop header
LB: loop body
LE: loop exit
PB: predicated region body
PF: predicated region fallthrough
CT: control target
= control target key end

     0   :  { %vm257_vm0 = vcmask 261120   ;;  %s1401_s0 = inlined_call_operand.vmem [shape: f32[8,32], index: 0, kind: input, shape index: {}]   ;;  %s1402_s1 = inlined_call_operand.vmem [shape: bf16[512,32], index: 1, kind: input, shape index: {}]   ;;  %s1403_s2 = inlined_call_operand.vmem [shape: f32[1,512], index: 2, kind: input, shape index: {}]   ;;  %s1404_s3 = inlined_call_operand.vmem [shape: bf16[128,512], index: 3, kind: input, shape index: {}]   ;;  %s1405_s4 = inlined_call_operand.vmem [shape: f32[1,128], index: 4, kind: input, shape index: {}]   ;;  %s1406_s5 = inlined_call_operand.hbm [shape: f32[8,128], index: 5, kind: output, shape index: {}]  }
   0x1   :  { %v965_v0 = vld [vmem:[%s1402_s1 + $0xb8] sm:$0xff]  ;;  %v964_v8 = vld [vmem:[%s1402_s1 + $0xb0] sm:$0xff] }
   0x2   :  { %v973_v1 = vld [vmem:[%s1402_s1 + $0xf8] sm:$0xff]  ;;  %v331_v4 = vsel %vm257_vm0, %v965_v0, 0  ;;  %v972_v9 = vld [vmem:[%s1402_s1 + $0xf0] sm:$0xff]  ;;  %v328_v12 = vsel %vm257_vm0, %v964_v8, 0 }
   0x3   :  { %v949_v2 = vld [vmem:[%s1402_s1 + $0x38] sm:$0xff]  ;;  %v355_v5 = vsel %vm257_vm0, %v973_v1, 0  ;;  %383 = vmatpush.bf16.xpose.msra.mxu2 %v331_v4  ;;  %v948_v10 = vld [vmem:[%s1402_s1 + $0x30] sm:$0xff]  ;;  %v352_v13 = vsel %vm257_vm0, %v972_v9, 0 }
   0x4   :  { %v957_v3 = vld [vmem:[%s1402_s1 + $0x78] sm:$0xff]  ;;  %v283_v6 = vsel %vm257_vm0, %v949_v2, 0  ;;  %396 = vmatpush.bf16.xpose.msra.mxu3 %v355_v5  ;;  %v956_v11 = vld [vmem:[%s1402_s1 + $0x70] sm:$0xff] }
   0x5   :  { %v307_v7 = vsel %vm257_vm0, %v957_v3, 0  ;;  %357 = vmatpush.bf16.xpose.msra.mxu0 %v283_v6 }
   0x6   :  { %370 = vmatpush.bf16.xpose.msra.mxu1 %v307_v7 }
   0x7   :  { %10 = vsyncpa [#allocation3], 0  ;;  %v280_v14 = vsel %vm257_vm0, %v948_v10, 0  ;;  %v304_v15 = vsel %vm257_vm0, %v956_v11, 0  ;;  %v963_v16 = vld [vmem:[%s1402_s1 + $0xa8] sm:$0xff]  ;;  %v962_v24 = vld [vmem:[%s1402_s1 + $0xa0] sm:$0xff] }
   0x8   :  { %v971_v17 = vld [vmem:[%s1402_s1 + $0xe8] sm:$0xff]  ;;  %v325_v20 = vsel %vm257_vm0, %v963_v16, 0  ;;  %v970_v25 = vld [vmem:[%s1402_s1 + $0xe0] sm:$0xff]  ;;  %v322_v28 = vsel %vm257_vm0, %v962_v24, 0  ;;  %v961_v32 = vld [vmem:[%s1402_s1 + $0x98] sm:$0xff]  ;;  %s673_s8 = sshll.u32 %s1406_s5, 4  ;;  %s674_s8 = int_to_ptr.hbm [resolvable:$true] %s673_s8 }
   0x9   :  { %v947_v18 = vld [vmem:[%s1402_s1 + $0x28] sm:$0xff]  ;;  %v349_v21 = vsel %vm257_vm0, %v971_v17, 0  ;;  %v946_v26 = vld [vmem:[%s1402_s1 + $0x20] sm:$0xff]  ;;  %v346_v29 = vsel %vm257_vm0, %v970_v25, 0  ;;  %v969_v33 = vld [vmem:[%s1402_s1 + $0xd8] sm:$0xff]  ;;  %v319_v36 = vsel %vm257_vm0, %v961_v32, 0 }
   0xa   :  { %v955_v19 = vld [vmem:[%s1402_s1 + $0x68] sm:$0xff]  ;;  %v277_v22 = vsel %vm257_vm0, %v947_v18, 0  ;;  %v954_v27 = vld [vmem:[%s1402_s1 + $0x60] sm:$0xff]  ;;  %v274_v30 = vsel %vm257_vm0, %v946_v26, 0  ;;  %v945_v34 = vld [vmem:[%s1402_s1 + $0x18] sm:$0xff]  ;;  %v343_v37 = vsel %vm257_vm0, %v969_v33, 0 }
   0xb   :  { %384 = vmatpush.bf16.xpose.msra.mxu2 %v328_v12  ;;  %v301_v23 = vsel %vm257_vm0, %v955_v19, 0  ;;  %v298_v31 = vsel %vm257_vm0, %v954_v27, 0  ;;  %v953_v35 = vld [vmem:[%s1402_s1 + $0x58] sm:$0xff]  ;;  %v271_v38 = vsel %vm257_vm0, %v945_v34, 0  ;;  %v960_v40 = vld [vmem:[%s1402_s1 + $0x90] sm:$0xff]  ;;  %v959_v48 = vld [vmem:[%s1402_s1 + $0x88] sm:$0xff] }
   0xc   :  { %397 = vmatpush.bf16.xpose.msra.mxu3 %v352_v13  ;;  %v295_v39 = vsel %vm257_vm0, %v953_v35, 0  ;;  %v968_v41 = vld [vmem:[%s1402_s1 + $0xd0] sm:$0xff]  ;;  %v316_v44 = vsel %vm257_vm0, %v960_v40, 0  ;;  %v967_v49 = vld [vmem:[%s1402_s1 + $0xc8] sm:$0xff]  ;;  %v313_v52 = vsel %vm257_vm0, %v959_v48, 0  ;;  %v958_v56 = vld [vmem:[%s1402_s1 + $0x80] sm:$0xff] }
   0xd   :  { %358 = vmatpush.bf16.xpose.msra.mxu0 %v280_v14  ;;  %v944_v42 = vld [vmem:[%s1402_s1 + $0x10] sm:$0xff]  ;;  %v340_v45 = vsel %vm257_vm0, %v968_v41, 0  ;;  %v943_v50 = vld [vmem:[%s1402_s1 + $0x8] sm:$0xff]  ;;  %v337_v53 = vsel %vm257_vm0, %v967_v49, 0  ;;  %v966_v57 = vld [vmem:[%s1402_s1 + $0xc0] sm:$0xff]  ;;  %v310_v4 = vsel %vm257_vm0, %v958_v56, 0 }
   0xe   :  { %371 = vmatpush.bf16.xpose.msra.mxu1 %v304_v15  ;;  %v952_v43 = vld [vmem:[%s1402_s1 + $0x50] sm:$0xff]  ;;  %v268_v46 = vsel %vm257_vm0, %v944_v42, 0  ;;  %v951_v51 = vld [vmem:[%s1402_s1 + $0x48] sm:$0xff]  ;;  %v265_v54 = vsel %vm257_vm0, %v943_v50, 0  ;;  %v942_v58 = vld [vmem:[%s1402_s1] sm:$0xff]  ;;  %v334_v5 = vsel %vm257_vm0, %v966_v57, 0 }
   0xf   :  { %v292_v47 = vsel %vm257_vm0, %v952_v43, 0  ;;  %v289_v55 = vsel %vm257_vm0, %v951_v51, 0  ;;  %v950_v59 = vld [vmem:[%s1402_s1 + $0x40] sm:$0xff]  ;;  %v1004_v61 = vld [vmem:[%s1404_s3 + $0xec] sm:$0xf0]  ;;  %v262_v6 = vsel %vm257_vm0, %v942_v58, 0 }
  0x10   :  { %v928_v60 = vld [vmem:[%s1404_s3 + $0xe0] sm:$0xf]  ;;  %v1002_v62 = vld [vmem:[%s1404_s3 + $0xe4] sm:$0xf]  ;;  %v930_v63 = vld [vmem:[%s1404_s3 + $0xf0] sm:$0xf0] }
  0x11   :  { %v936_v0 = vld [vmem:[%s1404_s3 + $0xe8] sm:$0xf]  ;;  %v1005_v1 = vld [vmem:[%s1404_s3 + $0xf4] sm:$0xf0]  ;;  %v1003_v2 = vld [vmem:[%s1404_s3 + $0xec] sm:$0xf]  ;;  %v929_v8 = vor.u32 %v1004_v61, %v928_v60  ;;  %v933_v9 = vor.u32 %v1002_v62, %v930_v63 }
  0x12   :  { %v938_v3 = vld [vmem:[%s1404_s3 + $0xf8] sm:$0xf0]  ;;  %v286_v7 = vsel %vm257_vm0, %v950_v59, 0  ;;  %v937_v10 = vor.u32 %v1005_v1, %v936_v0  ;;  %v21_v12 = vld [vmem:[%s1401_s0] sm:$0xff]  ;;  %v1000_v14 = vld [vmem:[%s1404_s3 + $0xcc] sm:$0xf0] }
  0x13   :  { %385 = vmatpush.bf16.xpose.msra.mxu2 %v325_v20  ;;  %v941_v11 = vor.u32 %v1003_v2, %v938_v3  ;;  %v912_v13 = vld [vmem:[%s1404_s3 + $0xc0] sm:$0xf]  ;;  %v22_v15 = vpack.c.bf16 %v21_v12, %v21_v12  ;;  %v998_v16 = vld [vmem:[%s1404_s3 + $0xc4] sm:$0xf]  ;;  %v914_v17 = vld [vmem:[%s1404_s3 + $0xd0] sm:$0xf0] }
  0x14   :  { %398 = vmatpush.bf16.xpose.msra.mxu3 %v349_v21  ;;  %v920_v18 = vld [vmem:[%s1404_s3 + $0xc8] sm:$0xf]  ;;  %v1001_v19 = vld [vmem:[%s1404_s3 + $0xd4] sm:$0xf0]  ;;  %v999_v20 = vld [vmem:[%s1404_s3 + $0xcc] sm:$0xf] }
  0x15   :  { %359 = vmatpush.bf16.xpose.msra.mxu0 %v277_v22  ;;  %v922_v21 = vld [vmem:[%s1404_s3 + $0xd8] sm:$0xf0]  ;;  %v913_v22 = vor.u32 %v1000_v14, %v912_v13  ;;  %v921_v24 = vor.u32 %v1001_v19, %v920_v18  ;;  %v896_v26 = vld [vmem:[%s1404_s3 + $0xa0] sm:$0xf]  ;;  %v996_v27 = vld [vmem:[%s1404_s3 + $0xac] sm:$0xf0] }
  0x16   :  { %372 = vmatpush.bf16.xpose.msra.mxu1 %v301_v23  ;;  %v917_v23 = vor.u32 %v998_v16, %v914_v17  ;;  %v925_v25 = vor.u32 %v999_v20, %v922_v21  ;;  %v995_v32 = vld [vmem:[%s1404_s3 + $0xac] sm:$0xf]  ;;  %v906_v33 = vld [vmem:[%s1404_s3 + $0xb8] sm:$0xf0]  ;;  %v897_v34 = vor.u32 %v996_v27, %v896_v26  ;;  %v990_v40 = vld [vmem:[%s1404_s3 + $0x84] sm:$0xf] }
  0x17   :  { %v882_v41 = vld [vmem:[%s1404_s3 + $0x90] sm:$0xf0]  ;;  %v888_v42 = vld [vmem:[%s1404_s3 + $0x88] sm:$0xf]  ;;  %v993_v43 = vld [vmem:[%s1404_s3 + $0x94] sm:$0xf0] }
  0x18   :  { %v889_v48 = vor.u32 %v993_v43, %v888_v42  ;;  %v864_v50 = vld [vmem:[%s1404_s3 + $0x60] sm:$0xf]  ;;  %v988_v51 = vld [vmem:[%s1404_s3 + $0x6c] sm:$0xf0]  ;;  %v987_v56 = vld [vmem:[%s1404_s3 + $0x6c] sm:$0xf] }
  0x19   :  { %v874_v57 = vld [vmem:[%s1404_s3 + $0x78] sm:$0xf0]  ;;  %v865_v58 = vor.u32 %v988_v51, %v864_v50  ;;  %v848_v62 = vld [vmem:[%s1404_s3 + $0x40] sm:$0xf]  ;;  %v984_v63 = vld [vmem:[%s1404_s3 + $0x4c] sm:$0xf0] }
  0x1a   :  { %v877_v61 = vor.u32 %v987_v56, %v874_v57  ;;  %v982_v0 = vld [vmem:[%s1404_s3 + $0x44] sm:$0xf]  ;;  %v850_v1 = vld [vmem:[%s1404_s3 + $0x50] sm:$0xf0]  ;;  %v856_v2 = vld [vmem:[%s1404_s3 + $0x48] sm:$0xf] }
  0x1b   :  { %386 = vmatpush.bf16.xpose.msra.mxu2 %v322_v28  ;;  %v994_v28 = vld [vmem:[%s1404_s3 + $0xa4] sm:$0xf]  ;;  %v985_v3 = vld [vmem:[%s1404_s3 + $0x54] sm:$0xf0]  ;;  %v834_v13 = vld [vmem:[%s1404_s3 + $0x30] sm:$0xf0] }
  0x1c   :  { %399 = vmatpush.bf16.xpose.msra.mxu3 %v346_v29  ;;  %v898_v29 = vld [vmem:[%s1404_s3 + $0xb0] sm:$0xf0]  ;;  %v978_v12 = vld [vmem:[%s1404_s3 + $0x24] sm:$0xf]  ;;  %v840_v14 = vld [vmem:[%s1404_s3 + $0x28] sm:$0xf] }
  0x1d   :  { %360 = vmatpush.bf16.xpose.msra.mxu0 %v274_v30  ;;  %v904_v30 = vld [vmem:[%s1404_s3 + $0xa8] sm:$0xf]  ;;  %v901_v35 = vor.u32 %v994_v28, %v898_v29  ;;  %v979_v16 = vld [vmem:[%s1404_s3 + $0x2c] sm:$0xf]  ;;  %v842_v17 = vld [vmem:[%s1404_s3 + $0x38] sm:$0xf0]  ;;  %v837_v19 = vor.u32 %v978_v12, %v834_v13 }
  0x1e   :  { %373 = vmatpush.bf16.xpose.msra.mxu1 %v298_v31  ;;  %v997_v31 = vld [vmem:[%s1404_s3 + $0xb4] sm:$0xf0]  ;;  %v845_v21 = vor.u32 %v979_v16, %v842_v17  ;;  %v818_v26 = vld [vmem:[%s1404_s3 + $0x10] sm:$0xf0]  ;;  %v824_v28 = vld [vmem:[%s1404_s3 + $0x8] sm:$0xf] }
  0x1f   :  { %v977_v29 = vld [vmem:[%s1404_s3 + $0x14] sm:$0xf0]  ;;  %s1034_s0 = smov [#allocation2]  }
  0x20   :  { %s671_s30 = sshll.u32 %s1034_s0, 4  ;;  %s672_s30 = int_to_ptr.vmem [resolvable:$true] %s671_s30 }
  0x23   :  { %387 = vmatpush.bf16.xpose.msra.mxu2 %v319_v36  ;;  %v905_v36 = vor.u32 %v997_v31, %v904_v30  ;;  %v825_v30 = vor.u32 %v977_v29, %v824_v28  ;;  %v975_v31 = vld [vmem:[%s1404_s3 + $0xc] sm:$0xf] }
  0x24   :  { %400 = vmatpush.bf16.xpose.msra.mxu3 %v343_v37  ;;  %v909_v37 = vor.u32 %v995_v32, %v906_v33  ;;  %v826_v32 = vld [vmem:[%s1404_s3 + $0x18] sm:$0xf0] }
  0x25   :  { %361 = vmatpush.bf16.xpose.msra.mxu0 %v271_v38  ;;  %v880_v38 = vld [vmem:[%s1404_s3 + $0x80] sm:$0xf]  ;;  %v829_v33 = vor.u32 %v975_v31, %v826_v32 }
  0x26   :  { %374 = vmatpush.bf16.xpose.msra.mxu1 %v295_v39  ;;  %v992_v39 = vld [vmem:[%s1404_s3 + $0x8c] sm:$0xf0] }
  0x2b   :  { %388 = vmatpush.bf16.xpose.msra.mxu2 %v316_v44  ;;  %v991_v44 = vld [vmem:[%s1404_s3 + $0x8c] sm:$0xf] }
  0x2c   :  { %401 = vmatpush.bf16.xpose.msra.mxu3 %v340_v45  ;;  %v890_v45 = vld [vmem:[%s1404_s3 + $0x98] sm:$0xf0] }
  0x2d   :  { %362 = vmatpush.bf16.xpose.msra.mxu0 %v268_v46  ;;  %v881_v46 = vor.u32 %v992_v39, %v880_v38  ;;  %v893_v49 = vor.u32 %v991_v44, %v890_v45 }
  0x2e   :  { %375 = vmatpush.bf16.xpose.msra.mxu1 %v292_v47  ;;  %v885_v47 = vor.u32 %v990_v40, %v882_v41 }
  0x33   :  { %389 = vmatpush.bf16.xpose.msra.mxu2 %v313_v52  ;;  %v986_v52 = vld [vmem:[%s1404_s3 + $0x64] sm:$0xf] }
  0x34   :  { %402 = vmatpush.bf16.xpose.msra.mxu3 %v337_v53  ;;  %v866_v53 = vld [vmem:[%s1404_s3 + $0x70] sm:$0xf0] }
  0x35   :  { %363 = vmatpush.bf16.xpose.msra.mxu0 %v265_v54  ;;  %v872_v54 = vld [vmem:[%s1404_s3 + $0x68] sm:$0xf]  ;;  %v869_v59 = vor.u32 %v986_v52, %v866_v53 }
  0x36   :  { %376 = vmatpush.bf16.xpose.msra.mxu1 %v289_v55  ;;  %v989_v55 = vld [vmem:[%s1404_s3 + $0x74] sm:$0xf0] }
  0x37   :  { %v873_v60 = vor.u32 %v989_v55, %v872_v54 }
  0x3b   :  { %390 = vmatpush.bf16.xpose.msra.mxu2 %v310_v4  ;;  %v983_v4 = vld [vmem:[%s1404_s3 + $0x4c] sm:$0xf] }
  0x3c   :  { %403 = vmatpush.bf16.xpose.msra.mxu3 %v334_v5  ;;  %v858_v5 = vld [vmem:[%s1404_s3 + $0x58] sm:$0xf0] }
  0x3d   :  { %364 = vmatpush.bf16.xpose.msra.mxu0 %v262_v6  ;;  %v849_v6 = vor.u32 %v984_v63, %v848_v62 }
  0x3e   :  { %377 = vmatpush.bf16.xpose.msra.mxu1 %v286_v7  ;;  %v853_v7 = vor.u32 %v982_v0, %v850_v1 }
  0x42   :  { %812 = vmatmul.msk.bf16.vlgmr.msra.gmra.mxu2 %vm257_vm0, %v22_v15 }
  0x43   :  { %639 = vmatpush.bf16.xpose.msrb.mxu2 %v937_v10  ;;  %813 = vmatmul.msk.bf16.vlgmr.msra.gmra.mxu3 %vm257_vm0, %v22_v15  ;;  %v832_v10 = vld [vmem:[%s1404_s3 + $0x20] sm:$0xf] }
  0x44   :  { %652 = vmatpush.bf16.xpose.msrb.mxu3 %v941_v11  ;;  %810 = vmatmul.msk.bf16.vlgmr.msra.gmra.mxu0 %vm257_vm0, %v22_v15  ;;  %v980_v11 = vld [vmem:[%s1404_s3 + $0x2c] sm:$0xf0] }
  0x45   :  { %613 = vmatpush.bf16.xpose.msrb.mxu0 %v929_v8  ;;  %811 = vmatmul.msk.bf16.vlgmr.msra.gmra.mxu1 %vm257_vm0, %v22_v15  ;;  %v857_v8 = vor.u32 %v985_v3, %v856_v2  ;;  %v981_v15 = vld [vmem:[%s1404_s3 + $0x34] sm:$0xf0]  ;;  %v833_v18 = vor.u32 %v980_v11, %v832_v10 }
  0x46   :  { %626 = vmatpush.bf16.xpose.msrb.mxu1 %v933_v9  ;;  %v861_v9 = vor.u32 %v983_v4, %v858_v5  ;;  %v841_v20 = vor.u32 %v981_v15, %v840_v14 }
  0x4b   :  { %640 = vmatpush.bf16.xpose.msrb.mxu2 %v921_v24 }
  0x4c   :  { %653 = vmatpush.bf16.xpose.msrb.mxu3 %v925_v25  ;;  %v974_v25 = vld [vmem:[%s1404_s3 + $0x4] sm:$0xf] }
  0x4d   :  { %614 = vmatpush.bf16.xpose.msrb.mxu0 %v913_v22  ;;  %v816_v22 = vld [vmem:[%s1404_s3] sm:$0xf]  ;;  %v821_v27 = vor.u32 %v974_v25, %v818_v26 }
  0x4e   :  { %627 = vmatpush.bf16.xpose.msrb.mxu1 %v917_v23  ;;  %v976_v23 = vld [vmem:[%s1404_s3 + $0xc] sm:$0xf0] }
  0x4f   :  { %v817_v24 = vor.u32 %v976_v23, %v816_v22 }
  0x53   :  { %641 = vmatpush.bf16.xpose.msrb.mxu2 %v905_v36 }
  0x54   :  { %654 = vmatpush.bf16.xpose.msrb.mxu3 %v909_v37 }
  0x55   :  { %615 = vmatpush.bf16.xpose.msrb.mxu0 %v897_v34  ;;  %v87_v34 = vld [vmem:[%s1403_s2] sm:$0xf] }
  0x56   :  { %628 = vmatpush.bf16.xpose.msrb.mxu1 %v901_v35  ;;  %v89_v35 = vperm.slane %v87_v34, 0  ;;  %v90_v36 = vperm.slane %v87_v34, 1  ;;  %v91_v41 = vperm.slane %v87_v34, 2  ;;  %v92_v42 = vperm.slane %v87_v34, 3 }
  0x5b   :  { %642 = vmatpush.bf16.xpose.msrb.mxu2 %v889_v48 }
  0x5c   :  { %655 = vmatpush.bf16.xpose.msrb.mxu3 %v893_v49 }
  0x5d   :  { %616 = vmatpush.bf16.xpose.msrb.mxu0 %v881_v46 }
  0x5e   :  { %629 = vmatpush.bf16.xpose.msrb.mxu1 %v885_v47 }
  0x63   :  { %643 = vmatpush.bf16.xpose.msrb.mxu2 %v873_v60 }
  0x64   :  { %656 = vmatpush.bf16.xpose.msrb.mxu3 %v877_v61 }
  0x65   :  { %617 = vmatpush.bf16.xpose.msrb.mxu0 %v865_v58 }
  0x66   :  { %630 = vmatpush.bf16.xpose.msrb.mxu1 %v869_v59  ;;  %v1007_v59 = vld [vmem:[%s1405_s4] ss:$0 sm:$0xff] }
  0x6b   :  { %644 = vmatpush.bf16.xpose.msrb.mxu2 %v857_v8 }
  0x6c   :  { %657 = vmatpush.bf16.xpose.msrb.mxu3 %v861_v9 }
  0x6d   :  { %618 = vmatpush.bf16.xpose.msrb.mxu0 %v849_v6 }
  0x6e   :  { %631 = vmatpush.bf16.xpose.msrb.mxu1 %v853_v7 }
  0x73   :  { %645 = vmatpush.bf16.xpose.msrb.mxu2 %v841_v20 }
  0x74   :  { %658 = vmatpush.bf16.xpose.msrb.mxu3 %v845_v21 }
  0x75   :  { %619 = vmatpush.bf16.xpose.msrb.mxu0 %v833_v18 }
  0x76   :  { %632 = vmatpush.bf16.xpose.msrb.mxu1 %v837_v19 }
  0x7b   :  { %646 = vmatpush.bf16.xpose.msrb.mxu2 %v825_v30 }
  0x7c   :  { %659 = vmatpush.bf16.xpose.msrb.mxu3 %v829_v33 }
  0x7d   :  { %620 = vmatpush.bf16.xpose.msrb.mxu0 %v817_v24 }
  0x7e   :  { %633 = vmatpush.bf16.xpose.msrb.mxu1 %v821_v27 }
  0xc1   :  { %v366_v37 = vpop.f32.mrf.mxu0 }
  0xc2   :  { %v379_v38 = vpop.f32.mrf.mxu1  ;;  %v367_v39 = vadd.f32 %v366_v37, %v89_v35 }
  0xc3   :  { %v380_v40 = vadd.f32 %v379_v38, %v90_v36 }
  0xc4   :  { %v409_v43 = vmax.f32 %v367_v39, 0.0 }
  0xc5   :  { %v410_v44 = vmax.f32 %v380_v40, 0.0  ;;  %v392_v47 = vpop.f32.mrf.mxu2 }
  0xc6   :  { %v413_v45 = vpack.c.bf16 %v409_v43, %v409_v43  ;;  %v405_v48 = vpop.f32.mrf.mxu3  ;;  %v393_v49 = vadd.f32 %v392_v47, %v91_v41 }
  0xc7   :  { %v414_v46 = vpack.c.bf16 %v410_v44, %v410_v44  ;;  %v406_v50 = vadd.f32 %v405_v48, %v92_v42 }
  0xc8   :  { %621 = vmatmul.bf16.vlgmr.msrb.gmra.mxu0 %v413_v45  ;;  %v411_v51 = vmax.f32 %v393_v49, 0.0 }
  0xc9   :  { %634 = vmatmul.bf16.vlgmr.msrb.gmra.mxu1 %v414_v46  ;;  %v412_v52 = vmax.f32 %v406_v50, 0.0  ;;  %v368_v53 = vpop.f32.mrf.mxu0 }
  0xca   :  { %v381_v54 = vpop.f32.mrf.mxu1  ;;  %v415_v55 = vpack.c.bf16 %v411_v51, %v411_v51 }
  0xcb   :  { %v416_v56 = vpack.c.bf16 %v412_v52, %v412_v52 }
  0xcc   :  { %647 = vmatmul.bf16.vlgmr.msrb.gmra.mxu2 %v415_v55 }
  0xcd   :  { %660 = vmatmul.bf16.vlgmr.msrb.gmra.mxu3 %v416_v56  ;;  %v394_v57 = vpop.f32.mrf.mxu2 }
  0xce   :  { %v407_v58 = vpop.f32.mrf.mxu3 }
 0x145   :  { %v622_v60 = vpop.f32.mrf.mxu0 }
 0x146   :  { %v635_v61 = vpop.f32.mrf.mxu1  ;;  %v623_v62 = vadd.f32 %v1007_v59, %v622_v60 }
 0x148   :  { %v636_v63 = vadd.f32 %v635_v61, %v623_v62 }
 0x14d   :  { %v624_v0 = vpop.f32.mrf.mxu0 }
 0x14e   :  { %v637_v1 = vpop.f32.mrf.mxu1 }
 0x14f   :  { %v648_v2 = vpop.f32.mrf.mxu2 }
 0x150   :  { %v661_v3 = vpop.f32.mrf.mxu3  ;;  %v649_v4 = vadd.f32 %v648_v2, %v636_v63 }
 0x152   :  { %v662_v5 = vadd.f32 %v661_v3, %v649_v4 }
 0x154   :  { %665 = vst [vmem:[#allocation2] sm:$0xff] %v662_v5 }
 0x155   :  { %676 = dma.vmem_to_hbm [thread:$0]  %s672_s30, 128, %s674_s8, [#allocation3]  }
 0x157   :  { %v650_v6 = vpop.f32.mrf.mxu2 }
 0x158   :  { %v663_v7 = vpop.f32.mrf.mxu3 }
 0x159   :  { %1032 = dma.done.wait [#allocation3], 128  }
 0x15a   :  { %1033 = vsyncadd [#allocation3], 4294967168 }
 0x15b   :  { %681 = vsyncpa [#allocation3], 1 }

</bundles_post_ra>
